<compile_context>
chip_gen: v7x
topology: tpu7x:2x2x1
jax: 0.10.0
libtpu: 0.0.40
codegen_flags: <defaults>
</compile_context>

<pallas_src>
import functools

import jax
import jax.numpy as jnp
from jax.experimental import pallas as pl
from jax.experimental.pallas import tpu as pltpu


def _block2d_kernel(x_ref, w_ref, o_ref, *, h_tile, k, neg_slope):
    # x_ref: (1, Hp, Lp)        bf16, BN affine already applied, zero-padded
    # w_ref: (K*Lp, W*Cout)     bf16 banded (Toeplitz-over-width) conv weights
    # o_ref: (1, h_tile, W*Cout) f32, lane-dense output slab
    #
    # Fused conv: one (h_tile, K*Lp) x (K*Lp, W*Cout) bf16 matmul, f32 accum.
    # Each per-dy slab is exactly Lp (=128) lanes wide, so the concatenation
    # along lanes is vreg-tile aligned.
    slabs = [x_ref[0, pl.ds(dy, h_tile), :] for dy in range(k)]
    lhs = jnp.concatenate(slabs, axis=-1)                     # (h_tile, K*Lp) bf16
    acc = jnp.dot(lhs, w_ref[...], preferred_element_type=jnp.float32)

    # LeakyReLU(negative_slope)
    o_ref[0] = jnp.where(acc >= 0, acc, neg_slope * acc).astype(o_ref.dtype)


def _build_banded_weights(conv_w_oikk, W, padding, lane_tile=128):
    """Stacked banded (Toeplitz-over-width) weights, one fused RHS.

    band[dy*Lp + (w+dx)*Cin + c, w*Cout + co] = w[co, c, dy, dx], zero on the
    lane-padding rows [Wp*Cin, Lp) of each dy-slab.  Depends only on the conv
    weights -> build once per weight update, reuse across forward calls.
    """
    Cout, Cin, K, _ = conv_w_oikk.shape
    Wp = W + 2 * padding
    L = Wp * Cin
    Lp = ((L + lane_tile - 1) // lane_tile) * lane_tile

    w_hwio = jnp.transpose(conv_w_oikk, (2, 3, 1, 0)).astype(jnp.float32)  # (K,K,Cin,Cout)
    band = jnp.zeros((K * Lp, W * Cout), jnp.float32)
    for dy in range(K):
        blk = jnp.zeros((L, W * Cout), jnp.float32)
        for dx in range(K):
            shift_mat = jnp.zeros((Wp, W), jnp.float32).at[
                dx + jnp.arange(W), jnp.arange(W)].set(1.0)        # [wi, w] = 1 iff wi == w+dx
            blk = blk + jnp.kron(shift_mat, w_hwio[dy, dx])        # (Wp*Cin, W*Cout)
        band = band.at[dy * Lp:dy * Lp + L, :].set(blk)
    return band.astype(jnp.bfloat16), Lp


def block2d_forward(x_nchw, conv_w_oikk, gamma, beta, *, kernel_size=3, padding=1,
                    eps=1e-5, negative_slope=0.1):
    """Forward pass of Block2D. x_nchw: (N, Cin, H, W). Returns (N, Cout, H, W)."""
    N, Cin, H, W = x_nchw.shape
    Cout, Cin_w, K, K2 = conv_w_oikk.shape
    assert Cin_w == Cin and K == kernel_size and K2 == kernel_size
    assert 2 * padding == K - 1, "this wrapper assumes 'same' spatial output"

    x_f32 = x_nchw.astype(jnp.float32)

    # Training-mode BatchNorm2d statistics (biased variance) -> per-channel affine.
    mean = jnp.mean(x_f32, axis=(0, 2, 3))                      # (Cin,)
    var = jnp.var(x_f32, axis=(0, 2, 3))                        # (Cin,) biased
    scale = gamma.astype(jnp.float32) * jax.lax.rsqrt(var + eps)
    shift = beta.astype(jnp.float32) - mean * scale

    Hp, Wp = H + 2 * padding, W + 2 * padding
    L = Wp * Cin

    # Banded conv weights (built once per weight update in a real model).
    w_band, Lp = _build_banded_weights(conv_w_oikk, W, padding)  # (K*Lp, W*Cout) bf16

    # One fused prologue over x: NCHW->NHWC transpose, BN affine, zero-pad
    # (the zero border IS the conv's post-BN padding), lane-pad each row slab
    # to Lp, cast to bf16.  The kernel then needs no masks and no casts.
    xn = jnp.transpose(x_f32, (0, 2, 3, 1)) * scale + shift               # (N,H,W,Cin)
    x_pad = jnp.pad(xn, ((0, 0), (padding, padding), (padding, padding), (0, 0)))
    x_in = jnp.pad(x_pad.reshape(N, Hp, L),
                   ((0, 0), (0, 0), (0, Lp - L))).astype(jnp.bfloat16)    # (N,Hp,Lp)

    # h_tile = H: one matmul per image, grid = (N,).  N "parallel" steps keep
    # both v7x TCs busy; fixed per-step overhead is minimized on all chips.
    h_tile = H
    kernel = functools.partial(_block2d_kernel, h_tile=h_tile, k=K,
                               neg_slope=negative_slope)

    out2d = pl.pallas_call(
        kernel,
        out_shape=jax.ShapeDtypeStruct((N, H, W * Cout), jnp.float32),
        grid_spec=pltpu.PrefetchScalarGridSpec(
            num_scalar_prefetch=0,
            grid=(N,),
            in_specs=[
                pl.BlockSpec((1, Hp, Lp), lambda n: (n, 0, 0)),
                # Constant weight block across the grid (no re-DMA per step).
                pl.BlockSpec((K * Lp, W * Cout), lambda n: (0, 0)),
            ],
            out_specs=pl.BlockSpec((1, h_tile, W * Cout), lambda n: (n, 0, 0)),
        ),
        compiler_params=pltpu.CompilerParams(
            dimension_semantics=("parallel",),
            vmem_limit_bytes=32 * 1024 * 1024,
        ),
    )(x_in, w_band)

    # Kernel stores are full-width (W*Cout lanes); this tiny permute stays in XLA.
    return jnp.transpose(out2d.reshape(N, H, W, Cout), (0, 3, 1, 2))


def _reference_forward(x_nchw, conv_w_oikk, gamma, beta, *, eps=1e-5):
    """Pure-JAX reference (same math) for a sanity check."""
    x = x_nchw.astype(jnp.float32)
    mean = jnp.mean(x, axis=(0, 2, 3), keepdims=True)
    var = jnp.var(x, axis=(0, 2, 3), keepdims=True)
    xn = (x - mean) / jnp.sqrt(var + eps)
    xn = xn * gamma.reshape(1, -1, 1, 1) + beta.reshape(1, -1, 1, 1)
    y = jax.lax.conv_general_dilated(
        xn, conv_w_oikk.astype(jnp.float32),
        window_strides=(1, 1), padding=((1, 1), (1, 1)),
        dimension_numbers=("NCHW", "OIHW", "NCHW"),
        precision=jax.lax.Precision.HIGHEST,
    )
    return jnp.where(y >= 0, y, 0.1 * y)


if __name__ == "__main__":
    key = jax.random.PRNGKey(0)
    k_x, k_w, k_g, k_b = jax.random.split(key, 4)

    N, Cin, Cout, H, W = 2, 4, 8, 16, 16
    K = 3

    x = jax.random.normal(k_x, (N, Cin, H, W), dtype=jnp.float32)
    conv_w = jax.random.normal(k_w, (Cout, Cin, K, K), dtype=jnp.float32) * 0.1
    gamma = 1.0 + 0.1 * jax.random.normal(k_g, (Cin,), dtype=jnp.float32)
    beta = 0.1 * jax.random.normal(k_b, (Cin,), dtype=jnp.float32)

    out = jax.jit(block2d_forward)(x, conv_w, gamma, beta)
    out = jax.block_until_ready(out)

    ref = _reference_forward(x, conv_w, gamma, beta)
    assert out.shape == (N, Cout, H, W), out.shape
    assert jnp.allclose(out, ref, atol=1e-2, rtol=1e-2), float(jnp.max(jnp.abs(out - ref)))

    print("KERNEL_OK")
</pallas_src>

<mosaic_0001>
module attributes {stable_mosaic.version = 11 : i64} {
  func.func @_block2d_kernel(%arg0: i32, %arg1: memref<1x18x128xbf16, #tpu.memory_space<vmem>>, %arg2: memref<384x128xbf16, #tpu.memory_space<vmem>>, %arg3: memref<1x16x128xf32, #tpu.memory_space<vmem>>) attributes {dimension_semantics = [#tpu.dimension_semantics<parallel>], iteration_bounds = array<i64: 2>, scalar_prefetch = 0 : i64, scratch_operands = 0 : i64, tpu.core_type = #tpu.core_type<tc>, window_params = [{transform_indices = @transform_0, window_bounds = array<i64: 1, 18, 128>}, {pipeline_mode = #tpu.pipeline_mode<synchronous>, transform_indices = @transform_1, window_bounds = array<i64: 384, 128>}, {transform_indices = @transform_2, window_bounds = array<i64: 1, 16, 128>}]} {
    %c0 = arith.constant 0 : index
    %c0_0 = arith.constant 0 : index
    %c0_1 = arith.constant 0 : index
    %0 = vector.load %arg1[%c0, %c0_0, %c0_1] : memref<1x18x128xbf16, #tpu.memory_space<vmem>>, vector<1x16x128xbf16>
    %1 = vector.shape_cast %0 : vector<1x16x128xbf16> to vector<16x128xbf16>
    %c0_2 = arith.constant 0 : index
    %c1 = arith.constant 1 : index
    %c0_3 = arith.constant 0 : index
    %2 = vector.load %arg1[%c0_2, %c1, %c0_3] : memref<1x18x128xbf16, #tpu.memory_space<vmem>>, vector<1x16x128xbf16>
    %3 = vector.shape_cast %2 : vector<1x16x128xbf16> to vector<16x128xbf16>
    %c0_4 = arith.constant 0 : index
    %c2 = arith.constant 2 : index
    %c0_5 = arith.constant 0 : index
    %4 = vector.load %arg1[%c0_4, %c2, %c0_5] : memref<1x18x128xbf16, #tpu.memory_space<vmem>>, vector<1x16x128xbf16>
    %5 = vector.shape_cast %4 : vector<1x16x128xbf16> to vector<16x128xbf16>
    %6 = tpu.concatenate %1, %3, %5 in 1 : vector<16x128xbf16>, vector<16x128xbf16>, vector<16x128xbf16> -> vector<16x384xbf16>
    %c0_6 = arith.constant 0 : index
    %c0_7 = arith.constant 0 : index
    %7 = vector.load %arg2[%c0_6, %c0_7] : memref<384x128xbf16, #tpu.memory_space<vmem>>, vector<384x128xbf16>
    %cst = arith.constant dense<0.000000e+00> : vector<16x128xf32>
    %8 = tpu.matmul %6, %7, %cst {dimension_numbers = #tpu.dot_dimension_numbers<[1], [0], [0], [1], [0, 0, 1, 1], [], []>} : vector<16x384xbf16>, vector<384x128xbf16>, vector<16x128xf32> -> vector<16x128xf32>
    %cst_8 = arith.constant 0.000000e+00 : f32
    %9 = vector.broadcast %cst_8 : f32 to vector<16x128xf32>
    %10 = arith.cmpf oge, %8, %9 : vector<16x128xf32>
    %cst_9 = arith.constant 1.000000e-01 : f32
    %11 = vector.broadcast %cst_9 : f32 to vector<16x128xf32>
    %12 = arith.mulf %11, %8 : vector<16x128xf32>
    %13 = arith.select %10, %8, %12 : vector<16x128xi1>, vector<16x128xf32>
    %c0_10 = arith.constant 0 : index
    %c0_11 = arith.constant 0 : index
    %c0_12 = arith.constant 0 : index
    %14 = vector.load %arg3[%c0_10, %c0_11, %c0_12] : memref<1x16x128xf32, #tpu.memory_space<vmem>>, vector<1x16x128xf32>
    %15 = vector.shape_cast %14 : vector<1x16x128xf32> to vector<16x128xf32>
    %16 = vector.shape_cast %13 : vector<16x128xf32> to vector<1x16x128xf32>
    tpu.vector_store %arg3[%c0_10, %c0_11, %c0_12], %16 {strides = array<i32>} : memref<1x16x128xf32, #tpu.memory_space<vmem>>, vector<1x16x128xf32>,
    return
  }
  func.func @transform_0(%arg0: i32) -> (i32, i32, i32) {
    %c0_i32 = arith.constant 0 : i32
    %c0_i32_0 = arith.constant 0 : i32
    %c0_i32_1 = arith.constant 0 : i32
    return %arg0, %c0_i32, %c0_i32_0 : i32, i32, i32
  }
  func.func @transform_1(%arg0: i32) -> (i32, i32) {
    %c0_i32 = arith.constant 0 : i32
    %c0_i32_0 = arith.constant 0 : i32
    %c0_i32_1 = arith.constant 0 : i32
    return %c0_i32, %c0_i32_0 : i32, i32
  }
  func.func @transform_2(%arg0: i32) -> (i32, i32, i32) {
    %c0_i32 = arith.constant 0 : i32
    %c0_i32_0 = arith.constant 0 : i32
    %c0_i32_1 = arith.constant 0 : i32
    return %arg0, %c0_i32, %c0_i32_0 : i32, i32, i32
  }
}

</mosaic_0001>

<bundles_post_ra>
// kernel: block2d_forward.1
= control target key start
LH: loop header
LB: loop body
LE: loop exit
PB: predicated region body
PF: predicated region fallthrough
CT: control target
= control target key end

     0   :  { %s669_s9 = smov 0   ;;  %s775_s0 = inlined_call_operand.vmem [shape: bf16[2,18,128], index: 0, kind: input, shape index: {}]   ;;  %s776_s1 = inlined_call_operand.vmem [shape: bf16[384,128], index: 1, kind: input, shape index: {}]   ;;  %s777_s2 = inlined_call_operand.vmem [shape: f32[2,16,128], index: 2, kind: output, shape index: {}]  }
   0x1 LB: > { %s517_s10 = sadd.s32 4294967295, %s650_s9   ;;  %p521_p0 = scmp.ge.s32.totalorder %s650_s9, 1  ;;  %s650_s9 = sphi %s669_s9, %s12_s9  }
   0x2   : > { %p112_p1 = scmp.lt.s32.totalorder %s650_s9, 3 }
   0x4   : > { %p113_p2 = pnand %p521_p0, %p112_p1 }
   0x5   : > { %v617_v0 = vld [vmem:[%s776_s1 + $0x40] sm:$0xff] (!%p113_p2)   ;;  %v652_v1 = vmov (!%p113_p2), 0.0   ;;  %v620_v4 = vld [vmem:[%s776_s1 + $0x48] sm:$0xff] (!%p113_p2)   ;;  %vm653_vm0 = vmmov (!%p113_p2), 0   ;;  %v623_v7 = vld [vmem:[%s776_s1 + $0x50] sm:$0xff] (!%p113_p2)   ;;  %p134_p3 = scmp.lt.s32.totalorder (!%p113_p2), %s517_s10, 1 }
   0x6   : > { %116 = sbr.rel (%p113_p2) target bundleno = 261 (0x105), region = 28  ;;  %586 = vmatprep.subr.bf16.mxu1 (!%p113_p2), %v652_v1  ;;  %v618_v2 = vld [vmem:[%s776_s1] sm:$0xff] (!%p113_p2)   ;;  %555 = vmatprep.subr.bf16.mxu0 (!%p113_p2), %v617_v0  ;;  %v621_v5 = vld [vmem:[%s776_s1 + $0x8] sm:$0xff] (!%p113_p2)   ;;  %v624_v8 = vld [vmem:[%s776_s1 + $0x10] sm:$0xff] (!%p113_p2)   ;;  %vm175_vm1 = vcmask (!%p113_p2), 1046528  }
   0x7   : > { %v619_v3 = vld [vmem:[%s776_s1 + $0x80] sm:$0xff] (!%p113_p2)   ;;  %556 = vmatpush3.bf16.msra.mxu0 (!%p113_p2), %v618_v2  ;;  %602 = vmatprep.mubr.msk.bf16.mxu1 (!%p113_p2), %vm653_vm0, %v652_v1  ;;  %v622_v6 = vld [vmem:[%s776_s1 + $0x88] sm:$0xff] (!%p113_p2)   ;;  %v625_v9 = vld [vmem:[%s776_s1 + $0x90] sm:$0xff] (!%p113_p2)   ;;  %vm158_vm2 = vsmask.f32 (!%p113_p2), 7424 }
   0x8   : > { %587 = vmatpush3.bf16.msra.mxu1 (!%p113_p2), %v619_v3  ;;  %557 = vmatprep.subr.bf16.mxu0 (!%p113_p2), %v620_v4  ;;  %v626_v10 = vld [vmem:[%s776_s1 + $0x58] sm:$0xff] (!%p113_p2)   ;;  %v629_v13 = vld [vmem:[%s776_s1 + $0x60] sm:$0xff] (!%p113_p2)   ;;  %v632_v16 = vld [vmem:[%s776_s1 + $0x68] sm:$0xff] (!%p113_p2)  }
   0x9   : > { %588 = vmatprep.subr.bf16.mxu1 (!%p113_p2), %v652_v1  ;;  %v627_v11 = vld [vmem:[%s776_s1 + $0x18] sm:$0xff] (!%p113_p2)   ;;  %v630_v14 = vld [vmem:[%s776_s1 + $0x20] sm:$0xff] (!%p113_p2)   ;;  %v633_v17 = vld [vmem:[%s776_s1 + $0x28] sm:$0xff] (!%p113_p2)  }
   0xa   : > { %v628_v12 = vld [vmem:[%s776_s1 + $0x98] sm:$0xff] (!%p113_p2)   ;;  %v631_v15 = vld [vmem:[%s776_s1 + $0xa0] sm:$0xff] (!%p113_p2)   ;;  %v634_v18 = vld [vmem:[%s776_s1 + $0xa8] sm:$0xff] (!%p113_p2)  }
   0xb   : > { %558 = vmatpush3.bf16.msra.mxu0 (!%p113_p2), %v621_v5  ;;  %v635_v19 = vld [vmem:[%s776_s1 + $0x70] sm:$0xff] (!%p113_p2)   ;;  %v638_v22 = vld [vmem:[%s776_s1 + $0x78] sm:$0xff] (!%p113_p2)  }
   0xc   : > { %589 = vmatpush3.bf16.msra.mxu1 (!%p113_p2), %v622_v6  ;;  %559 = vmatprep.subr.bf16.mxu0 (!%p113_p2), %v623_v7  ;;  %v636_v20 = vld [vmem:[%s776_s1 + $0x30] sm:$0xff] (!%p113_p2)   ;;  %v639_v28 = vld [vmem:[%s776_s1 + $0x38] sm:$0xff] (!%p113_p2)  }
   0xd   : > { %590 = vmatprep.subr.bf16.mxu1 %v652_v1  ;;  %s779_s10 = smov (!%p134_p3, %s517_s10), 1  ;;  %v637_v21 = vld [vmem:[%s776_s1 + $0xb0] sm:$0xff]   ;;  %v640_v33 = vld [vmem:[%s776_s1 + $0xb8] sm:$0xff]  }
   0xe   : > { %s606_s17 = smul.u32 12, %s779_s10  ;;  %s554_s11 = sshll.u32 %s779_s10, 4 }
   0xf   : > { %560 = vmatpush3.bf16.msra.mxu0 %v624_v8  ;;  %s143_s14 = scalar_lea.vmem %s777_s2, %s554_s11 }
  0x10   : > { %591 = vmatpush3.bf16.msra.mxu1 %v625_v9  ;;  %561 = vmatprep.subr.bf16.mxu0 %v626_v10  ;;  %s138_s28 = scalar_lea.vmem %s775_s0, %s606_s17 }
  0x11   : > { %592 = vmatprep.subr.bf16.mxu1 %v652_v1  ;;  %v145_v23 = vld [vmem:[%s138_s28] sm:$0xf]  ;;  %v146_v24 = vld [vmem:[%s138_s28 + $0x4] sm:$0xf] }
  0x12   : > { %v525_v25 = vcombine.low %v145_v23, %v146_v24  ;;  %v642_v26 = vld [vmem:[%s138_s28 + $0x8] ss:$0 sps:$4 sm:$0x11]   ;;  %v148_v27 = vld [vmem:[%s138_s28] sm:$0xe] }
  0x13   : > { %562 = vmatpush3.bf16.msra.mxu0 %v627_v11  ;;  %v167_v31 = vshll.u32 %v642_v26, 16  ;;  %v527_v32 = vcombine.low %v148_v27, %v146_v24  ;;  %v177_v34 = vrot.slane %v642_v26, 1 }
  0x14   : > { %593 = vmatpush3.bf16.msra.mxu1 %v628_v12  ;;  %563 = vmatprep.subr.bf16.mxu0 %v629_v13  ;;  %v160_v29 = vshrl.u32 %v525_v25, 16  ;;  %v162_v30 = vshll.u32 %v525_v25, 16 }
  0x15   : > { %594 = vmatprep.subr.bf16.mxu1 %v652_v1  ;;  %v169_v36 = vrot.slane %v167_v31, 1  ;;  %v176_v37 = vrot.slane %v527_v32, 1 }
  0x16   : > { %v164_v35 = vrot.slane %v162_v30, 1 }
  0x17   : > { %564 = vmatpush3.bf16.msra.mxu0 %v630_v14  ;;  %v178_v39 = vsel %vm175_vm1, %v176_v37, %v177_v34 }
  0x18   : > { %595 = vmatpush3.bf16.msra.mxu1 %v631_v15  ;;  %565 = vmatprep.subr.bf16.mxu0 %v632_v16  ;;  %v165_v38 = vor.u32 %v164_v35, %v160_v29 }
  0x19   : > { %596 = vmatprep.subr.bf16.mxu1 %v652_v1 }
  0x1a   : > { %v170_v40 = vsel %vm158_vm2, %v165_v38, %v169_v36 }
  0x1b   : > { %566 = vmatpush3.bf16.msra.mxu0 %v633_v17  ;;  %404 = vmatprep.mubr.bf16.mxu0 %v170_v40 }
  0x1c   : > { %597 = vmatpush3.bf16.msra.mxu1 %v634_v18  ;;  %567 = vmatprep.subr.bf16.mxu0 %v635_v19 }
  0x1d   : > { %598 = vmatprep.subr.bf16.mxu1 %v652_v1 }
  0x1f   : > { %568 = vmatpush3.bf16.msra.mxu0 %v636_v20 }
  0x20   : > { %599 = vmatpush3.bf16.msra.mxu1 %v637_v21  ;;  %569 = vmatprep.subr.bf16.mxu0 %v638_v22 }
  0x21   : > { %600 = vmatprep.subr.bf16.mxu1 %v652_v1 }
  0x23   : > { %570 = vmatpush3.bf16.msra.mxu0 %v639_v28 }
  0x24   : > { %601 = vmatpush3.bf16.msra.mxu1 %v640_v33 }
  0x26   : > { %405 = vmatmul.mubr.bf16.vlgmr.msra.gmra.mrb[0].mxu0 %v525_v25 }
  0x27   : > { %603 = vmatmul.mubr.bf16.vlgmr.msra.gmra.mrb[0].mxu1 %v178_v39 }
  0xf9   : > { %v571_v41 = vpop.f32.mrb[0].mxu0 }
  0xfa   : > { %v447_v42 = vpop.f32.mrb[0].mxu1  ;;  %v572_v43 = vpop.f32.mrb[1].mxu0 }
  0xfb   : > { %v604_v44 = vpop.f32.mrb[1].mxu1  ;;  %v573_v45 = vadd.f32 %v572_v43, %v571_v41  ;;  %v574_v46 = vpop.f32.mrb[2].mxu0 }
  0xfc   : > { %v450_v47 = vpop.f32.mrb[2].mxu1  ;;  %v575_v48 = vpop.f32.mrb[3].mxu0 }
  0xfd   : > { %v605_v49 = vpop.f32.mrb[3].mxu1  ;;  %v448_v50 = vadd.f32 %v573_v45, %v447_v42  ;;  %v576_v51 = vadd.f32 %v575_v48, %v574_v46 }
  0xff   : > { %vm454_vm3 = vcmp.ge.f32.partialorder %v448_v50, 0.0  ;;  %v456_v52 = vmul.f32 0.1, %v448_v50  ;;  %v451_v53 = vadd.f32 %v576_v51, %v450_v47 }
 0x101   : > { %v458_v54 = vsel %vm454_vm3, %v448_v50, %v456_v52  ;;  %vm455_vm4 = vcmp.ge.f32.partialorder %v451_v53, 0.0  ;;  %v457_v55 = vmul.f32 0.1, %v451_v53 }
 0x102   : > { %460 = vst [vmem:[%s143_s14] sm:$0xff] %v458_v54 }
 0x103   : > { %v459_v56 = vsel %vm455_vm4, %v451_v53, %v457_v55 }
 0x104   : > { %461 = vst [vmem:[%s143_s14 + $0x8] sm:$0xff] %v459_v56 }
 0x105 PF: > { %s12_s9 = sadd.s32 1, %s650_s9  }
 0x106   : > { %p9_p4 = scmp.ge.s32.totalorder %s12_s9, 4  }
 0x108   :  { %11 = sbr.rel (!%p9_p4) target bundleno = 1 (0x1), region = 58 }

</bundles_post_ra>
